<compile_context>
chip_gen: v6e
topology: v6e:2x2x1
jax: 0.10.0
libtpu: 0.0.40
codegen_flags: <defaults>
</compile_context>

<pallas_src>
import functools

import jax
import jax.numpy as jnp
import numpy as np
from jax.experimental import pallas as pl
from jax.experimental.pallas import tpu as pltpu

BN_EPS = 1e-5


# ---------------------------------------------------------------------------
# matmul helpers (optionally run the MXU in a narrower compute dtype,
# always accumulate in f32)
# ---------------------------------------------------------------------------
def _mm(a, b, compute_dtype):
    if compute_dtype is not None:
        a = a.astype(compute_dtype)
        b = b.astype(compute_dtype)
    return jnp.dot(a, b, preferred_element_type=jnp.float32)


def _mm_nt(a, b, compute_dtype):
    """a @ b.T without materializing a transpose: contract the shared last axis."""
    if compute_dtype is not None:
        a = a.astype(compute_dtype)
        b = b.astype(compute_dtype)
    return jax.lax.dot_general(
        a, b,
        dimension_numbers=(((1,), (1,)), ((), ())),
        preferred_element_type=jnp.float32)


# ---------------------------------------------------------------------------
# kernels
# ---------------------------------------------------------------------------
def _energy_kernel(compute_dtype,
                   xh_ref, xl_ref,
                   tw_ref, tb_ref,
                   pw_ref, pb_ref,
                   attn_ref):
    """attn_partial[split, b] += theta_tile @ phi_tile^T (accumulated over N tiles)."""
    @pl.when(pl.program_id(2) == 0)
    def _():
        attn_ref[...] = jnp.zeros_like(attn_ref)

    theta = _mm(tw_ref[...], xh_ref[0], compute_dtype) + tb_ref[...]   # (low, tn) f32
    phi = _mm(pw_ref[...], xl_ref[0], compute_dtype) + pb_ref[...]     # (low, tn) f32

    # NT contraction over the spatial (lane) axis -> (low, low); no XLU transpose.
    attn_ref[...] += _mm_nt(theta, phi, compute_dtype)[None, None]


def _apply_kernel(compute_dtype,
                  xh_ref, xl_ref, m_ref, c_ref,
                  out_ref):
    """Per (batch, N-tile): out = M[b] @ xl_t + c[b] + xh_t (single MXU matmul)."""
    y = _mm(m_ref[0], xl_ref[0], compute_dtype)                        # (high, tn) f32
    out_ref[0] = (y + c_ref[0] + xh_ref[0].astype(jnp.float32)).astype(out_ref.dtype)


# ---------------------------------------------------------------------------
# tiling
# ---------------------------------------------------------------------------
def _round_up(a, b):
    return -(-a // b) * b


def _select_tiling(N, high, low, in_bytes, out_bytes, w_bytes):
    """Pick (tn, nt, n_split, n_padded, vmem_limit_bytes) from the VMEM capacity."""
    try:
        cap = int(pltpu.get_tpu_info().vmem_capacity_bytes)
    except Exception:
        cap = 64 * 1024 * 1024  # conservative (v7x-sized) fallback
    budget = int(cap * 0.70)          # what tiles may consume (leave Mosaic headroom)
    vmem_limit = int(cap * 0.85)      # scoped limit handed to the compiler

    # bytes that do not scale with tn (double-buffered weight/bias/attn/M/c blocks)
    fixed = 2 * ((low * high + low * low) * w_bytes + 2 * low * 4   # pass-1 weights+biases
                 + low * low * 4                                    # attn output block
                 + high * low * w_bytes + high * 4)                 # pass-2 M + c blocks
    # bytes per unit of tn (double-buffered activation tiles + f32 intermediates)
    per_tn = (2 * (high + low) * in_bytes
              + 2 * high * out_bytes
              + 4 * (high + 2 * low))

    n_lane = _round_up(N, 128)
    tn = max(128, min(((budget - fixed) // max(per_tn, 1)) // 128 * 128, 2048, n_lane))
    nt = -(-n_lane // tn)
    if nt >= 2:
        nt = _round_up(nt, 2)   # allow a 2-way split of the reduction (megacore)
        n_split = 2
    else:
        n_split = 1
    # re-balance the tile size so padding stays small (never exceeds the budgeted tn)
    tn = _round_up(-(-n_lane // nt), 128)
    n_padded = nt * tn
    return tn, nt, n_split, n_padded, vmem_limit


# ---------------------------------------------------------------------------
# wrapper
# ---------------------------------------------------------------------------
def cnl_forward(x_h, x_l, params, *, compute_dtype=jnp.bfloat16):
    """x_h: (B, high_dim, H, W); x_l: (B, low_dim, H, W)  (flag=0: same H, W).

    compute_dtype: dtype of the MXU operands (f32 accumulation always);
    None keeps the native activation dtype (full-f32 matmuls).
    """
    B, high_dim, H, W = x_h.shape
    Bl, low_dim, Hl, Wl = x_l.shape
    N = H * W
    assert Bl == B and Hl * Wl == N, "flag=0 CNL requires matching spatial extents"

    xh = x_h.reshape(B, high_dim, N)
    xl = x_l.reshape(B, low_dim, N)

    w_dtype = compute_dtype if compute_dtype is not None else xh.dtype
    in_bytes = np.dtype(xh.dtype).itemsize
    out_bytes = np.dtype(x_h.dtype).itemsize
    w_bytes = np.dtype(w_dtype).itemsize

    # Fold the 1/low_dim attention scale into theta (energy is linear in theta_x).
    inv_low = np.float32(1.0 / low_dim)
    theta_w = (params["theta_w"].astype(jnp.float32) * inv_low).astype(w_dtype)
    theta_b = params["theta_b"].astype(jnp.float32) * inv_low
    phi_w = params["phi_w"].astype(w_dtype)
    phi_b = params["phi_b"].astype(jnp.float32)
    g_w = params["g_w"].astype(jnp.float32)
    g_b = params["g_b"].astype(jnp.float32)

    # Fold eval-mode BatchNorm (running stats + affine) into the W conv.
    bn_scale = params["bn_gamma"].astype(jnp.float32) / jnp.sqrt(
        params["bn_var"].astype(jnp.float32) + BN_EPS)
    wf_w = params["W_w"].astype(jnp.float32) * bn_scale
    wf_b = ((params["W_b"].astype(jnp.float32) - params["bn_mean"].astype(jnp.float32))
            * bn_scale + params["bn_beta"].astype(jnp.float32))

    tn, nt, n_split, n_padded, vmem_limit = _select_tiling(
        N, high_dim, low_dim, in_bytes, out_bytes, w_bytes)
    n_pad = n_padded - N
    if n_pad:
        xh = jnp.pad(xh, ((0, 0), (0, 0), (0, n_pad)))
        xl = jnp.pad(xl, ((0, 0), (0, 0), (0, n_pad)))
    nts = nt // n_split

    full = lambda shape: pl.BlockSpec(shape, lambda s, b, n: (0,) * len(shape))

    # ---- pass 1: per-batch attention matrix (low, low), accumulated over N tiles,
    #      2-way split of the reduction along a parallel axis (megacore-friendly).
    attn_parts = pl.pallas_call(
        functools.partial(_energy_kernel, compute_dtype),
        out_shape=jax.ShapeDtypeStruct((n_split, B, low_dim, low_dim), jnp.float32),
        grid=(n_split, B, nts),
        in_specs=[
            pl.BlockSpec((1, high_dim, tn), lambda s, b, n: (b, 0, s * nts + n)),  # x_h
            pl.BlockSpec((1, low_dim, tn), lambda s, b, n: (b, 0, s * nts + n)),   # x_l
            full((low_dim, high_dim)), full((low_dim, 1)),   # theta (pre-scaled)
            full((low_dim, low_dim)), full((low_dim, 1)),    # phi
        ],
        out_specs=pl.BlockSpec((1, 1, low_dim, low_dim), lambda s, b, n: (s, b, 0, 0)),
        compiler_params=pltpu.CompilerParams(
            dimension_semantics=("parallel", "parallel", "arbitrary"),
            vmem_limit_bytes=vmem_limit),
    )(xh, xl, theta_w, theta_b, phi_w, phi_b)

    attn = attn_parts.sum(axis=0)                               # (B, low, low) f32
    if n_pad:
        # zero-padded columns each contribute exactly theta_b' @ phi_b^T; remove them.
        attn = attn - np.float32(n_pad) * (theta_b @ phi_b.T)[None]

    # ---- algebraic fold: collapse attn @ g(.) and the BN-folded W conv into a
    #      single (high, low) matrix + (high, 1) bias per batch (tiny f32 einsums).
    hp = jax.lax.Precision.HIGHEST
    ag_w = jnp.einsum("blm,mk->blk", attn, g_w, precision=hp)            # (B, low, low)
    ag_b = jnp.einsum("blm,mo->blo", attn, g_b, precision=hp)            # (B, low, 1)
    m_fold = jnp.einsum("hl,blk->bhk", wf_w, ag_w, precision=hp).astype(w_dtype)  # (B, high, low)
    c_fold = jnp.einsum("hl,blo->bho", wf_w, ag_b, precision=hp) + wf_b[None]     # (B, high, 1) f32

    # ---- pass 2: out_t = M[b] @ xl_t + c[b] + xh_t, tile-by-tile (lane-dense stores)
    out = pl.pallas_call(
        functools.partial(_apply_kernel, compute_dtype),
        out_shape=jax.ShapeDtypeStruct((B, high_dim, n_padded), x_h.dtype),
        grid=(B, nt),
        in_specs=[
            pl.BlockSpec((1, high_dim, tn), lambda b, n: (b, 0, n)),        # x_h (residual)
            pl.BlockSpec((1, low_dim, tn), lambda b, n: (b, 0, n)),         # x_l
            pl.BlockSpec((1, high_dim, low_dim), lambda b, n: (b, 0, 0)),   # M[b]
            pl.BlockSpec((1, high_dim, 1), lambda b, n: (b, 0, 0)),         # c[b]
        ],
        out_specs=pl.BlockSpec((1, high_dim, tn), lambda b, n: (b, 0, n)),
        compiler_params=pltpu.CompilerParams(
            dimension_semantics=("parallel", "parallel"),
            vmem_limit_bytes=vmem_limit),
    )(xh, xl, m_fold, c_fold)

    if n_pad:
        out = out[:, :, :N]
    return out.reshape(B, high_dim, H, W)


# ---------------------------------------------------------------------------
# params + pure-JAX reference
# ---------------------------------------------------------------------------
def init_params(key, high_dim, low_dim):
    ks = jax.random.split(key, 4)

    def conv_init(k, c_out, c_in):
        bound = 1.0 / np.sqrt(c_in)  # torch Conv2d default init range
        kw, kb = jax.random.split(k)
        w = jax.random.uniform(kw, (c_out, c_in), jnp.float32, -bound, bound)
        b = jax.random.uniform(kb, (c_out, 1), jnp.float32, -bound, bound)
        return w, b

    g_w, g_b = conv_init(ks[0], low_dim, low_dim)
    theta_w, theta_b = conv_init(ks[1], low_dim, high_dim)
    phi_w, phi_b = conv_init(ks[2], low_dim, low_dim)
    W_w, W_b = conv_init(ks[3], high_dim, low_dim)
    return dict(
        g_w=g_w, g_b=g_b, theta_w=theta_w, theta_b=theta_b,
        phi_w=phi_w, phi_b=phi_b, W_w=W_w, W_b=W_b,
        # PyTorch __init__ state: BN affine zero-init, running stats (0, 1).
        bn_gamma=jnp.zeros((high_dim, 1), jnp.float32),
        bn_beta=jnp.zeros((high_dim, 1), jnp.float32),
        bn_mean=jnp.zeros((high_dim, 1), jnp.float32),
        bn_var=jnp.ones((high_dim, 1), jnp.float32),
    )


def cnl_reference(x_h, x_l, params):
    """Pure-JAX reference mirroring the PyTorch forward (flag=0, BN eval mode)."""
    B, high_dim, H, W = x_h.shape
    low_dim = x_l.shape[1]
    N = H * W
    xh = x_h.reshape(B, high_dim, N).astype(jnp.float32)
    xl = x_l.reshape(B, low_dim, x_l.shape[2] * x_l.shape[3]).astype(jnp.float32)
    hp = jax.lax.Precision.HIGHEST
    g_x = jnp.einsum("oc,bcn->bon", params["g_w"], xl, precision=hp) + params["g_b"]
    theta_x = jnp.einsum("oc,bcn->bon", params["theta_w"], xh, precision=hp) + params["theta_b"]
    phi_x = jnp.einsum("oc,bcn->bon", params["phi_w"], xl, precision=hp) + params["phi_b"]
    energy = jnp.einsum("bln,bmn->blm", theta_x, phi_x, precision=hp)
    attention = energy / energy.shape[-1]
    y = jnp.einsum("blm,bmn->bln", attention, g_x, precision=hp)
    wy = jnp.einsum("oc,bcn->bon", params["W_w"], y, precision=hp) + params["W_b"]
    scale = params["bn_gamma"] / jnp.sqrt(params["bn_var"] + BN_EPS)
    wy = (wy - params["bn_mean"]) * scale + params["bn_beta"]
    return (wy + xh).reshape(B, high_dim, H, W).astype(x_h.dtype)


if __name__ == "__main__":
    B, high_dim, low_dim, H, W = 2, 16, 8, 16, 16  # N = 256 (lane-aligned)
    key = jax.random.PRNGKey(0)
    k_h, k_l, k_p, k_bn = jax.random.split(key, 4)

    x_h = jax.random.normal(k_h, (B, high_dim, H, W), jnp.float32)
    x_l = jax.random.normal(k_l, (B, low_dim, H, W), jnp.float32)
    params = init_params(k_p, high_dim, low_dim)

    # Non-trivial BatchNorm affine/running stats so the attention + W branch
    # contributes (with zero-init gamma/beta the module reduces to identity on x_h).
    kg, kb, km, kv = jax.random.split(k_bn, 4)
    params["bn_gamma"] = jax.random.normal(kg, (high_dim, 1), jnp.float32)
    params["bn_beta"] = jax.random.normal(kb, (high_dim, 1), jnp.float32)
    params["bn_mean"] = 0.1 * jax.random.normal(km, (high_dim, 1), jnp.float32)
    params["bn_var"] = jnp.abs(jax.random.normal(kv, (high_dim, 1), jnp.float32)) + 0.5

    z_ref = cnl_reference(x_h, x_l, params)

    # default bf16 MXU path (f32 accumulation) — loose tolerance vs f32 reference
    z_bf16 = cnl_forward(x_h, x_l, params)
    jax.block_until_ready(z_bf16)
    np.testing.assert_allclose(np.asarray(z_bf16), np.asarray(z_ref), rtol=5e-2, atol=2e-1)

    # full-f32 compute path — tight tolerance
    z_f32 = cnl_forward(x_h, x_l, params, compute_dtype=None)
    jax.block_until_ready(z_f32)
    np.testing.assert_allclose(np.asarray(z_f32), np.asarray(z_ref), rtol=1e-3, atol=1e-3)

    # non lane-aligned spatial extent: exercises padding + attn bias correction, B=1
    H2, W2 = 10, 13  # N = 130 -> padded to 256
    x_h2 = jax.random.normal(k_h, (1, high_dim, H2, W2), jnp.float32)
    x_l2 = jax.random.normal(k_l, (1, low_dim, H2, W2), jnp.float32)
    z2 = cnl_forward(x_h2, x_l2, params, compute_dtype=None)
    jax.block_until_ready(z2)
    z2_ref = cnl_reference(x_h2, x_l2, params)
    np.testing.assert_allclose(np.asarray(z2), np.asarray(z2_ref), rtol=1e-3, atol=1e-3)

    print("KERNEL_OK")
</pallas_src>

<mosaic_0001>
module attributes {stable_mosaic.version = 11 : i64} {
  func.func @_energy_kernel(%arg0: i32, %arg1: i32, %arg2: i32, %arg3: memref<1x16x256xf32, #tpu.memory_space<vmem>>, %arg4: memref<1x8x256xf32, #tpu.memory_space<vmem>>, %arg5: memref<8x16xbf16, #tpu.memory_space<vmem>>, %arg6: memref<8x1xf32, #tpu.memory_space<vmem>>, %arg7: memref<8x8xbf16, #tpu.memory_space<vmem>>, %arg8: memref<8x1xf32, #tpu.memory_space<vmem>>, %arg9: memref<1x1x8x8xf32, #tpu.memory_space<vmem>>) attributes {dimension_semantics = [#tpu.dimension_semantics<parallel>, #tpu.dimension_semantics<parallel>, #tpu.dimension_semantics<arbitrary>], iteration_bounds = array<i64: 1, 2, 1>, scalar_prefetch = 0 : i64, scratch_operands = 0 : i64, tpu.core_type = #tpu.core_type<tc>, window_params = [{transform_indices = @transform_0, window_bounds = array<i64: 1, 16, 256>}, {transform_indices = @transform_1, window_bounds = array<i64: 1, 8, 256>}, {pipeline_mode = #tpu.pipeline_mode<synchronous>, transform_indices = @transform_2, window_bounds = array<i64: 8, 16>}, {pipeline_mode = #tpu.pipeline_mode<synchronous>, transform_indices = @transform_3, window_bounds = array<i64: 8, 1>}, {pipeline_mode = #tpu.pipeline_mode<synchronous>, transform_indices = @transform_4, window_bounds = array<i64: 8, 8>}, {pipeline_mode = #tpu.pipeline_mode<synchronous>, transform_indices = @transform_5, window_bounds = array<i64: 8, 1>}, {transform_indices = @transform_6, window_bounds = array<i64: 1, 1, 8, 8>}]} {
    %c0_i32 = arith.constant 0 : i32
    %0 = arith.cmpi eq, %arg2, %c0_i32 : i32
    %1 = arith.extui %0 : i1 to i32
    %c0_i32_0 = arith.constant 0 : i32
    %2 = arith.cmpi ne, %1, %c0_i32_0 : i32
    scf.if %2 {
      %cst_24 = arith.constant 0.000000e+00 : f32
      %26 = vector.broadcast %cst_24 : f32 to vector<1x1x8x8xf32>
      %c0_25 = arith.constant 0 : index
      %c0_26 = arith.constant 0 : index
      %c0_27 = arith.constant 0 : index
      %c0_28 = arith.constant 0 : index
      %27 = vector.load %arg9[%c0_25, %c0_26, %c0_27, %c0_28] : memref<1x1x8x8xf32, #tpu.memory_space<vmem>>, vector<1x1x8x8xf32>
      tpu.vector_store %arg9[%c0_25, %c0_26, %c0_27, %c0_28], %26 {strides = array<i32>} : memref<1x1x8x8xf32, #tpu.memory_space<vmem>>, vector<1x1x8x8xf32>,
    } else {
    }
    %c0 = arith.constant 0 : index
    %c0_1 = arith.constant 0 : index
    %3 = vector.load %arg5[%c0, %c0_1] : memref<8x16xbf16, #tpu.memory_space<vmem>>, vector<8x16xbf16>
    %c0_2 = arith.constant 0 : index
    %c0_3 = arith.constant 0 : index
    %c0_4 = arith.constant 0 : index
    %4 = vector.load %arg3[%c0_2, %c0_3, %c0_4] : memref<1x16x256xf32, #tpu.memory_space<vmem>>, vector<1x16x256xf32>
    %5 = vector.shape_cast %4 : vector<1x16x256xf32> to vector<16x256xf32>
    %6 = arith.truncf %5 : vector<16x256xf32> to vector<16x256xbf16>
    %cst = arith.constant dense<0.000000e+00> : vector<8x256xf32>
    %7 = tpu.matmul %3, %6, %cst {dimension_numbers = #tpu.dot_dimension_numbers<[1], [0], [0], [1], [0, 0, 1, 1], [], []>} : vector<8x16xbf16>, vector<16x256xbf16>, vector<8x256xf32> -> vector<8x256xf32>
    %c0_5 = arith.constant 0 : index
    %c0_6 = arith.constant 0 : index
    %8 = vector.load %arg6[%c0_5, %c0_6] : memref<8x1xf32, #tpu.memory_space<vmem>>, vector<8x1xf32>
    %9 = vector.broadcast %8 : vector<8x1xf32> to vector<8x256xf32>
    %10 = arith.addf %7, %9 : vector<8x256xf32>
    %c0_7 = arith.constant 0 : index
    %c0_8 = arith.constant 0 : index
    %11 = vector.load %arg7[%c0_7, %c0_8] : memref<8x8xbf16, #tpu.memory_space<vmem>>, vector<8x8xbf16>
    %c0_9 = arith.constant 0 : index
    %c0_10 = arith.constant 0 : index
    %c0_11 = arith.constant 0 : index
    %12 = vector.load %arg4[%c0_9, %c0_10, %c0_11] : memref<1x8x256xf32, #tpu.memory_space<vmem>>, vector<1x8x256xf32>
    %13 = vector.shape_cast %12 : vector<1x8x256xf32> to vector<8x256xf32>
    %14 = arith.truncf %13 : vector<8x256xf32> to vector<8x256xbf16>
    %cst_12 = arith.constant dense<0.000000e+00> : vector<8x256xf32>
    %15 = tpu.matmul %11, %14, %cst_12 {dimension_numbers = #tpu.dot_dimension_numbers<[1], [0], [0], [1], [0, 0, 1, 1], [], []>} : vector<8x8xbf16>, vector<8x256xbf16>, vector<8x256xf32> -> vector<8x256xf32>
    %c0_13 = arith.constant 0 : index
    %c0_14 = arith.constant 0 : index
    %16 = vector.load %arg8[%c0_13, %c0_14] : memref<8x1xf32, #tpu.memory_space<vmem>>, vector<8x1xf32>
    %17 = vector.broadcast %16 : vector<8x1xf32> to vector<8x256xf32>
    %18 = arith.addf %15, %17 : vector<8x256xf32>
    %c0_15 = arith.constant 0 : index
    %c0_16 = arith.constant 0 : index
    %c0_17 = arith.constant 0 : index
    %c0_18 = arith.constant 0 : index
    %19 = vector.load %arg9[%c0_15, %c0_16, %c0_17, %c0_18] : memref<1x1x8x8xf32, #tpu.memory_space<vmem>>, vector<1x1x8x8xf32>
    %20 = arith.truncf %10 : vector<8x256xf32> to vector<8x256xbf16>
    %21 = arith.truncf %18 : vector<8x256xf32> to vector<8x256xbf16>
    %cst_19 = arith.constant dense<0.000000e+00> : vector<8x8xf32>
    %22 = tpu.matmul %20, %21, %cst_19 {dimension_numbers = #tpu.dot_dimension_numbers<[1], [1], [0], [0], [0, 0, 1, 0], [], []>} : vector<8x256xbf16>, vector<8x256xbf16>, vector<8x8xf32> -> vector<8x8xf32>
    %23 = vector.shape_cast %22 : vector<8x8xf32> to vector<1x1x8x8xf32>
    %24 = arith.addf %19, %23 : vector<1x1x8x8xf32>
    %c0_20 = arith.constant 0 : index
    %c0_21 = arith.constant 0 : index
    %c0_22 = arith.constant 0 : index
    %c0_23 = arith.constant 0 : index
    %25 = vector.load %arg9[%c0_20, %c0_21, %c0_22, %c0_23] : memref<1x1x8x8xf32, #tpu.memory_space<vmem>>, vector<1x1x8x8xf32>
    tpu.vector_store %arg9[%c0_20, %c0_21, %c0_22, %c0_23], %24 {strides = array<i32>} : memref<1x1x8x8xf32, #tpu.memory_space<vmem>>, vector<1x1x8x8xf32>,
    return
  }
  func.func @transform_0(%arg0: i32, %arg1: i32, %arg2: i32) -> (i32, i32, i32) {
    %c1_i32 = arith.constant 1 : i32
    %0 = arith.muli %arg0, %c1_i32 : i32
    %1 = arith.addi %0, %arg2 : i32
    %c0_i32 = arith.constant 0 : i32
    %c0_i32_0 = arith.constant 0 : i32
    return %arg1, %c0_i32, %1 : i32, i32, i32
  }
  func.func @transform_1(%arg0: i32, %arg1: i32, %arg2: i32) -> (i32, i32, i32) {
    %c1_i32 = arith.constant 1 : i32
    %0 = arith.muli %arg0, %c1_i32 : i32
    %1 = arith.addi %0, %arg2 : i32
    %c0_i32 = arith.constant 0 : i32
    %c0_i32_0 = arith.constant 0 : i32
    return %arg1, %c0_i32, %1 : i32, i32, i32
  }
  func.func @transform_2(%arg0: i32, %arg1: i32, %arg2: i32) -> (i32, i32) {
    %c0_i32 = arith.constant 0 : i32
    %c0_i32_0 = arith.constant 0 : i32
    %c0_i32_1 = arith.constant 0 : i32
    return %c0_i32, %c0_i32_0 : i32, i32
  }
  func.func @transform_3(%arg0: i32, %arg1: i32, %arg2: i32) -> (i32, i32) {
    %c0_i32 = arith.constant 0 : i32
    %c0_i32_0 = arith.constant 0 : i32
    %c0_i32_1 = arith.constant 0 : i32
    return %c0_i32, %c0_i32_0 : i32, i32
  }
  func.func @transform_4(%arg0: i32, %arg1: i32, %arg2: i32) -> (i32, i32) {
    %c0_i32 = arith.constant 0 : i32
    %c0_i32_0 = arith.constant 0 : i32
    %c0_i32_1 = arith.constant 0 : i32
    return %c0_i32, %c0_i32_0 : i32, i32
  }
  func.func @transform_5(%arg0: i32, %arg1: i32, %arg2: i32) -> (i32, i32) {
    %c0_i32 = arith.constant 0 : i32
    %c0_i32_0 = arith.constant 0 : i32
    %c0_i32_1 = arith.constant 0 : i32
    return %c0_i32, %c0_i32_0 : i32, i32
  }
  func.func @transform_6(%arg0: i32, %arg1: i32, %arg2: i32) -> (i32, i32, i32, i32) {
    %c0_i32 = arith.constant 0 : i32
    %c0_i32_0 = arith.constant 0 : i32
    %c0_i32_1 = arith.constant 0 : i32
    return %arg0, %arg1, %c0_i32, %c0_i32_0 : i32, i32, i32, i32
  }
}

</mosaic_0001>

<bundles_post_ra>
// kernel: tpu_custom_call.1
= control target key start
LH: loop header
LB: loop body
LE: loop exit
PB: predicated region body
PF: predicated region fallthrough
CT: control target
= control target key end

     0   :  { %s1127_s0 = inlined_call_operand.hbm [shape: f32[2,16,256], index: 0, kind: input, shape index: {}]   ;;  %s1128_s1 = inlined_call_operand.hbm [shape: f32[2,8,256], index: 1, kind: input, shape index: {}]   ;;  %s1129_s2 = inlined_call_operand.vmem [shape: bf16[8,16], index: 2, kind: input, shape index: {}]   ;;  %s1130_s3 = inlined_call_operand.vmem [shape: f32[8,1], index: 3, kind: input, shape index: {}]   ;;  %s1131_s4 = inlined_call_operand.vmem [shape: bf16[8,8], index: 4, kind: input, shape index: {}]   ;;  %s1132_s5 = inlined_call_operand.vmem [shape: f32[8,1], index: 5, kind: input, shape index: {}]   ;;  %s1133_s6 = inlined_call_operand.hbm [shape: f32[1,2,8,8], index: 6, kind: output, shape index: {}]  }
   0x1   :  { %1136 = sst [smem:[#allocation14_spill]] %s1127_s0 }
   0x2   :  { %11 = vsyncpa [#allocation3], 0 }
   0x3   :  { %13 = vsyncpa [#allocation3 + $0x1], 0 }
   0x4   :  { %14 = vsyncpa [#allocation6], 0 }
   0x5   :  { %16 = vsyncpa [#allocation6 + $0x1], 0 }
   0x6   :  { %17 = vsyncpa [#allocation4], 0 }
   0x7   :  { %19 = vsyncpa [#allocation4 + $0x1], 0  ;;  %s931_s21 = smov 0   ;;  %s933_s22 = smov 0  }
   0x8   :  { %s935_s23 = smov 0   ;;  %s937_s24 = smov 0  }
   0x9   :  { %s939_s25 = smov 0   ;;  %s941_s26 = smov 0  }
   0xa LB: > { %1137 = sst [smem:[#allocation11_spill]] %s875_s23  ;;  %s652_s27 = sadd.s32 4294967295, %s887_s26   ;;  %s887_s26 = sphi %s941_s26, %s25_s26   ;;  %s883_s25 = sphi %s939_s25, %s1153_s25   ;;  %s879_s24 = sphi %s937_s24, %s1152_s24   ;;  %s875_s23 = sphi %s935_s23, %s1148_s23   ;;  %s871_s22 = sphi %s933_s22, %s1151_s22   ;;  %s867_s21 = sphi %s931_s21, %s1150_s21  }
   0xb   : > { %s653_s28 = sadd.s32 4294967294, %s887_s26   ;;  %s40_s29 = sadd.s32 1, %s883_s25 }
   0xc   : > { %s55_s30 = sadd.s32 1, %s875_s23  ;;  %p42_p0 = scmp.ge.s32.totalorder %s40_s29, 2 }
   0xd   : > { %p62_p1 = scmp.ne.s32.totalorder %s875_s23, %s871_s22  ;;  %p63_p2 = scmp.eq.s32.totalorder %s887_s26, 0 }
   0xe   : > { %p68_p3 = scmp.ne.s32.totalorder %s871_s22, %s867_s21  ;;  %s1155_s29 = smov (%p42_p0, %s40_s29), 0 }
   0xf   : > { %1138 = sst [smem:[#allocation12_spill]] %s1155_s29  ;;  %p972_p4 = por %p63_p2, %p62_p1 }
  0x10   : > { %p69_p5 = scmp.eq.s32.totalorder %s652_s27, 0  ;;  %s50_s8 = ssub.s32 %s883_s25, %s1155_s29 }
  0x11   : > { %p208_p6 = scmp.eq.s32.totalorder %s652_s27, 1  ;;  %p53_p7 = scmp.eq.s32.totalorder %s50_s8, 0 }
  0x12   : > { %p978_p8 = por %p69_p5, %p68_p3  ;;  %p214_p10 = scmp.eq.s32.totalorder %s653_s28, 1 }
  0x13   : > { %p982_p9 = por %p208_p6, %p62_p1  ;;  %p655_p12 = scmp.ge.s32.totalorder %s887_s26, 2 }
  0x14   : > { %s987_s11 = scalar_select %p53_p7, %s875_s23, %s55_s30  }
  0x15   : > { %p989_p11 = por %p214_p10, %p68_p3  ;;  %p692_p13 = scmp.lt.s32.totalorder %s887_s26, 2 }
  0x16   : > { %1142 = sst [smem:[#allocation13_spill]] %s987_s11  ;;  %s996_s13 = sand.u32 1, %s875_s23  }
  0x17   : > { %s656_s14 = sshll.u32 %s996_s13, 5  ;;  %s673_s15 = sshll.u32 %s883_s25, 9 }
  0x18   : > { %s1144_s0 = sld [smem:[#allocation14_spill]]  ;;  %s250_s19 = scalar_lea.vmem [#allocation2], %s656_s14 }
  0x19   : > { %s260_s20 = sshll.u32 %s250_s19, 4  ;;  %p1005_p0 = pnand %p692_p13, %p972_p4  ;;  %s261_s20 = int_to_ptr.vmem [resolvable:$true] %s260_s20 }
  0x1a   : > { %p662_p1 = scmp.ge.s32.totalorder %s887_s26, 1  ;;  %s247_s28 = scalar_lea.sflag [#allocation3], %s996_s13 }
  0x1b   : > { %p749_p2 = pneg %p1005_p0  ;;  %s760_s30 = scalar_lea.vmem %s261_s20, 512 }
  0x1c   : > { %p761_p3 = scmp.ne.s32.totalorder %s261_s20, %s760_s30  ;;  %s889_s8 = smov [#allocation2]  }
  0x1d   : > { %s765_s14 = sshll.u32 %s889_s8, 4  ;;  %s766_s14 = int_to_ptr.vmem [resolvable:$false] %s765_s14 }
  0x1e   : > { %s259_s18 = scalar_lea.hbm %s1144_s0, %s673_s15  ;;  %p763_p5 = pnand %p761_p3, %p749_p2 }
  0x1f   : > { %s767_s7 = scalar_lea.vmem %s766_s14, 1024  ;;  %p768_p4 = scmp.lt.s32.totalorder %s261_s20, %s766_s14 }
  0x20   : > { %p764_p6 = pneg %p763_p5  ;;  %p769_p7 = scmp.lt.s32.totalorder %s767_s7, %s760_s30 }
  0x22   : > { %p770_p10 = por %p769_p7, %p768_p4 }
  0x24   : > { %p771_p13 = pnand %p770_p10, %p764_p6 }
  0x26   : > { %774 = shalt.err (!%p771_p13)
}
  0x27   : > { %s890_s15 = smov 256   ;;  %s891_s16 = smov 16  }
  0x28   : > { %684 = dma.hbm_to_vmem [thread:$0]  (!%p1005_p0), %s259_s18, 512, %s261_s20, %s247_s28, %s890_s15, %s890_s15, %s891_s16  }
  0x29   : > { %p290_p3 = scmp.lt.s32.totalorder %s887_s26, 3  ;;  %s659_s17 = sshll.u32 %s996_s13, 4 }
  0x2a   : > { %s674_s19 = sshll.u32 %s883_s25, 8  ;;  %s274_s0 = scalar_lea.vmem [#allocation5], %s659_s17 }
  0x2b   : > { %p1023_p5 = pnand %p662_p1, %p290_p3  ;;  %s283_s7 = scalar_lea.hbm %s1128_s1, %s674_s19 }
  0x2c   : > { %s285_s29 = sshll.u32 %s274_s0, 4  ;;  %s271_s11 = scalar_lea.sflag [#allocation6], %s996_s13  ;;  %s286_s29 = int_to_ptr.vmem [resolvable:$true] %s285_s29 }
  0x2d   : > { %s788_s23 = scalar_lea.vmem %s286_s29, 256  ;;  %s892_s18 = smov [#allocation5]  }
  0x2e   : > { %p789_p6 = scmp.ne.s32.totalorder %s286_s29, %s788_s23  ;;  %s793_s20 = sshll.u32 %s892_s18, 4  ;;  %s794_s20 = int_to_ptr.vmem [resolvable:$false] %s793_s20 }
  0x2f   : > { %s795_s28 = scalar_lea.vmem %s794_s20, 512  ;;  %p796_p1 = scmp.lt.s32.totalorder %s286_s29, %s794_s20 }
  0x30   : > { %p791_p4 = pnand %p789_p6, %p749_p2  ;;  %p797_p10 = scmp.lt.s32.totalorder %s795_s28, %s788_s23 }
  0x32   : > { %p792_p7 = pneg %p791_p4  ;;  %p798_p13 = por %p797_p10, %p796_p1 }
  0x34   : > { %p799_p3 = pnand %p798_p13, %p792_p7 }
  0x36   : > { %802 = shalt.err (!%p799_p3)
}
  0x37   : > { %687 = dma.hbm_to_vmem [thread:$0]  (!%p1005_p0), %s283_s7, 256, %s286_s29, %s271_s11  }
  0x38   : > { %294 = sbr.rel (%p1023_p5) target bundleno = 490 (0x1ea), region = 44  ;;  %s1039_s0 = sand.u32 (!%p1023_p5), 1, %s871_s22  }
  0x39   : > { %s663_s13 = sshll.u32 (!%p1023_p5), %s1039_s0, 5  ;;  %s297_s15 = scalar_lea.sflag (!%p1023_p5), [#allocation3], %s1039_s0 }
  0x3a   : > { %s300_s16 = scalar_lea.vmem (!%p1023_p5), [#allocation2], %s663_s13 }
  0x3d   : > { %854 = dma.done.wait (%p978_p8), %s297_s15, 512  }
  0x3e   : > { %856 = vsyncadd (%p978_p8), %s297_s15, 4294966784  ;;  %s664_s23 = sshll.u32 %s1039_s0, 4  ;;  %s306_s29 = scalar_lea.sflag [#allocation6], %s1039_s0 }
  0x3f   : > { %s309_s11 = scalar_lea.vmem [#allocation5], %s664_s23 }
  0x40   : > { %858 = dma.done.wait (%p978_p8), %s306_s29, 256  }
  0x41   : > { %860 = vsyncadd (%p978_p8), %s306_s29, 4294967040  ;;  %v893_v0 = vmov 0   ;;  %v356_v1 = vld [vmem:[%s300_s16 + $0x8] sm:$0xff]  ;;  %v358_v2 = vld [vmem:[%s300_s16 + $0x18] sm:$0xff]  ;;  %vm427_vm0 = vcmask 1043456   ;;  %vm367_vm1 = vcmask 130048  }
  0x42   : > { %403 = vmatprep.mubr.bf16.mxu0 %v893_v0  ;;  %466 = vmatprep.mubr.bf16.mxu1 %v893_v0  ;;  %v414_v3 = vld [vmem:[%s309_s11 + $0x8] sm:$0xff]  ;;  %v360_v4 = vpack.c.bf16 %v358_v2, %v356_v1  ;;  %v355_v6 = vld [vmem:[%s300_s16] sm:$0xff]  ;;  %v357_v7 = vld [vmem:[%s300_s16 + $0x10] sm:$0xff]  ;;  %vm352_vm2 = vcmask 64512   ;;  %s665_s18 = sshll.u32 %s1039_s0, 3  ;;  %v894_v16 = vmov 0.0  }
  0x43   : > { %746 = vset.pattern.permute.xlu0 %v893_v0  ;;  %v416_v5 = vpack.c.bf16 %v414_v3, %v414_v3  ;;  %v413_v8 = vld [vmem:[%s309_s11] sm:$0xff]  ;;  %v359_v9 = vpack.c.bf16 %v357_v7, %v355_v6  ;;  %s1067_s20 = scalar_lea.vmem [#allocation7], %s665_s18  ;;  %s670_s28 = sshll.u32 %s879_s24, 7 }
  0x44   : > { %v415_v10 = vpack.c.bf16 %v413_v8, %v413_v8  ;;  %v417_v11 = vld [vmem:[%s1132_s5] sm:$0xff]  ;;  %385 = vmatprep.subr.bf16.mxu0 %v360_v4  ;;  %353 = vst.msk [vmem:[%s1067_s20] sm:$0xff] %vm352_vm2, %v894_v16  ;;  %s538_s13 = sshll.u32 %s1067_s20, 4  ;;  %s1077_s23 = scalar_lea.hbm %s1133_s6, %s670_s28  ;;  %s1079_s13 = int_to_ptr.vmem [resolvable:$true] %s538_s13 }
  0x45   : > { %667 = vmatprep.subr.msk.bf16.mxu1 %vm427_vm0, %v416_v5  ;;  %386 = vmatpush1.bf16.msra.mxu0 %v359_v9  ;;  %v354_v13 = vld [vmem:[%s1129_s2] sm:$0xf]  ;;  %s523_s29 = scalar_lea.sflag [#allocation4], %s1039_s0  ;;  %s803_s11 = scalar_lea.vmem %s1079_s13, 128 }
  0x46   : > { %v429_v12 = vsel %vm427_vm0, %v415_v10, 0  ;;  %420 = vperm.xlu0 %746, %v417_v11   ;;  %v412_v14 = vld [vmem:[%s1131_s4] sm:$0xf]  ;;  %p804_p8 = scmp.ne.s32.totalorder %s1079_s13, %s803_s11  ;;  %s895_s24 = smov [#allocation7]  }
  0x47   : > { %449 = vmatpush1.bf16.msra.mxu1 %v429_v12  ;;  %v361_v15 = vld [vmem:[%s1130_s3] sm:$0xff]  ;;  %s807_s27 = sshll.u32 %s895_s24, 4  ;;  %s808_s27 = int_to_ptr.vmem [resolvable:$false] %s807_s27 }
  0x48   : > { %666 = vmatmul.mubr.msk.bf16.vlgmr.msra.gmra.mxu0 %vm367_vm1, %v354_v13  ;;  %p805_p0 = pnand %p804_p8, %p982_p9  ;;  %s809_s17 = scalar_lea.vmem %s808_s27, 256 }
  0x49   : > { %p810_p5 = scmp.lt.s32.totalorder %s1079_s13, %s808_s27  ;;  %p811_p6 = scmp.lt.s32.totalorder %s809_s17, %s803_s11 }
  0x4a   : > { %668 = vmatmul.mubr.msk.bf16.vlgmr.msra.gmra.mxu1 %vm352_vm2, %v412_v14  ;;  %364 = vperm.xlu0 %746, %v361_v15   ;;  %p806_p2 = pneg %p805_p0 }
  0x4b   : > { %v475_v35 = vld [vmem:[%s1067_s20] sm:$0xff]  ;;  %p812_p4 = por %p811_p6, %p810_p5 }
  0x4d   : > { %p813_p7 = pnand %p812_p4, %p806_p2 }
  0xc1   : > { %v421_v17 = vpop.permute.xlu0 %420 }
  0xc5   : > { %v365_v19 = vpop.permute.xlu0 %364 }
 0x108   : > { %v405_v18 = vpop.f32.mrf.mxu0 }
 0x109   : > { %v406_v33 = vadd.f32 %v405_v18, %v365_v19 }
 0x10a   : > { %v468_v20 = vpop.f32.mrf.mxu1  ;;  %v407_v21 = vpop.f32.mrf.mxu0 }
 0x10b   : > { %v469_v22 = vadd.f32 %v468_v20, %v421_v17  ;;  %v408_v24 = vadd.f32 %v407_v21, %v365_v19  ;;  %v476_v34 = vpack.c.bf16 %v406_v33, %v406_v33 }
 0x10c   : > { %v470_v23 = vpop.f32.mrf.mxu1  ;;  %v409_v26 = vpop.f32.mrf.mxu0 }
 0x10d   : > { %v471_v25 = vadd.f32 %v470_v23, %v421_v17  ;;  %v477_v27 = vpack.c.bf16 %v408_v24, %v408_v24  ;;  %v478_v31 = vpack.c.bf16 %v469_v22, %v469_v22 }
 0x10e   : > { %v472_v28 = vpop.f32.mrf.mxu1  ;;  %v410_v30 = vpop.f32.mrf.mxu0 }
 0x10f   : > { %v479_v29 = vpack.c.bf16 %v471_v25, %v471_v25  ;;  %512 = vmatprep.mubr.bf16.mxu0 %v477_v27 }
 0x110   : > { %v473_v32 = vpop.f32.mrf.mxu1 }
 0x111   : > { %494 = vmatprep.subr.bf16.mxu0 %v479_v29 }
 0x112   : > { %495 = vmatpush1.bf16.xpose.msra.mxu0 %v478_v31 }
 0x119   : > { %513 = vmatmul.mubr.bf16.vlgmr.msra.gmra.mxu0 %v476_v34 }
 0x1d9   : > { %v514_v36 = vpop.f32.mrf.mxu0 }
 0x1da   : > { %v520_v37 = vadd.f32 %v514_v36, %v475_v35 }
 0x1db   : > { %v516_v38 = vpop.f32.mrf.mxu0 }
 0x1dc   : > { %521 = vst.msk [vmem:[%s1067_s20] sm:$0xff] %vm352_vm2, %v520_v37 }
 0x1dd   : > { %v517_v39 = vpop.f32.mrf.mxu0 }
 0x1de   : > { %816 = shalt.err (!%p813_p7)
}
 0x1df   : > { %s817_s9 = scalar_lea.hbm %s1077_s23, 128  ;;  %s821_s30 = scalar_lea.hbm %s1133_s6, 256 }
 0x1e0   : > { %p818_p1 = scmp.ne.s32.totalorder %s1077_s23, %s817_s9  ;;  %p822_p3 = scmp.lt.s32.totalorder %s1077_s23, %s1133_s6 }
 0x1e1   : > { %p823_p8 = scmp.lt.s32.totalorder %s821_s30, %s817_s9 }
 0x1e2   : > { %p819_p10 = pnand %p818_p1, %p982_p9 }
 0x1e3   : > { %p824_p0 = por %p823_p8, %p822_p3 }
 0x1e4   : > { %p820_p13 = pneg %p819_p10 }
 0x1e6   : > { %p825_p2 = pnand %p824_p0, %p820_p13 }
 0x1e8   : > { %828 = shalt.err (!%p825_p2)
}
 0x1e9   : > { %679 = dma.vmem_to_hbm [thread:$0]  (%p982_p9), %s1079_s13, 128, %s1077_s23, %s523_s29   ;;  %v518_v40 = vpop.f32.mrf.mxu0 }
 0x1ea PF: > { %s550_s7 = sand.u32 1, %s867_s21   ;;  %p689_p5 = pnand %p655_p12, %p989_p11 }
 0x1eb   : > { %s551_s18 = scalar_lea.sflag [#allocation4], %s550_s7 }
 0x1ec   : > { %p690_p6 = pneg %p689_p5 }
 0x1ee   : > { %862 = dma.done.wait (%p690_p6), %s551_s18, 128  }
 0x1ef   : > { %864 = vsyncadd (%p690_p6), %s551_s18, 4294967168  ;;  %s25_s26 = sadd.s32 1, %s887_s26   ;;  %s1147_s10 = sld [smem:[#allocation11_spill]] }
 0x1f0   : > { %p22_p4 = scmp.ge.s32.totalorder %s25_s26, 4   ;;  %s1148_s23 = sld [smem:[#allocation13_spill]] }
 0x1f1   : > { %s1149_s20 = sld [smem:[#allocation12_spill]]  ;;  %s1150_s21 = smov %s871_s22 }
 0x1f2   : > { %s1152_s24 = smov %s883_s25 }
 0x1f3   :  { %24 = sbr.rel (!%p22_p4) target bundleno = 10 (0xa), region = 106 }
 0x1f5   : > { %s1151_s22 = smov %s1147_s10 }
 0x1f7   : > { %s1153_s25 = smov %s1149_s20 }
 0x1f8   :  { %556 = vsyncpa [#allocation3], 1 }
 0x1f9   :  { %558 = vsyncpa [#allocation3 + $0x1], 1 }
 0x1fa   :  { %559 = vsyncpa [#allocation6], 1 }
 0x1fb   :  { %561 = vsyncpa [#allocation6 + $0x1], 1 }
 0x1fc   :  { %562 = vsyncpa [#allocation4], 1 }
 0x1fd   :  { %564 = vsyncpa [#allocation4 + $0x1], 1 }

</bundles_post_ra>
